<compile_context>
chip_gen: v5e
topology: v5e:2x2
jax: 0.10.0
libtpu: 0.0.40
codegen_flags: <defaults>
</compile_context>

<pallas_src>
import functools

import jax
import jax.numpy as jnp
import numpy as np
from jax import lax
from jax.experimental import pallas as pl
from jax.experimental.pallas import tpu as pltpu

_BN_EPS = 1e-5


def _fr_kernel(xs_ref, w_ref, g_ref, b_ref, o_ref,
               sum_ref, ssq_ref, scale_ref, shift_ref, *, inv_m, eps):
    """Fused ReLU + (block-diag) stride-2 1x1 convs + two-pass BatchNorm.

    Grid = (pass, batch_n, hw_tile).  Pass 0 accumulates BN stats, pass 1
    normalizes and stores.

    xs_ref : (1, 2*C_in, T)  stacked [even-grid ; odd-odd-grid] pixels of one image
    w_ref  : (C_out, 2*C_in) block-diagonal combined 1x1 conv weight
    g_ref, b_ref : (C_out, 1) BN gamma / beta
    o_ref  : (1, C_out, T)   output tile
    scratch: per-channel sum / sum-of-squares / folded scale / shift columns
    """
    p = pl.program_id(0)          # 0 = stats pass, 1 = normalize pass
    n = pl.program_id(1)
    m = pl.program_id(2)
    is_first = jnp.logical_and(n == 0, m == 0)

    # ReLU (VPU) + both 1x1/stride-2 convs as one MXU matmul (block-diag weight).
    x = jnp.maximum(xs_ref[0], 0.0)                               # (2*C_in, T)
    y = jnp.dot(w_ref[...], x, preferred_element_type=jnp.float32)  # (C_out, T)

    @pl.when(jnp.logical_and(p == 0, is_first))
    def _():
        sum_ref[...] = jnp.zeros_like(sum_ref)
        ssq_ref[...] = jnp.zeros_like(ssq_ref)

    @pl.when(p == 0)
    def _():
        sum_ref[...] += jnp.sum(y, axis=1, keepdims=True)
        ssq_ref[...] += jnp.sum(y * y, axis=1, keepdims=True)

    @pl.when(jnp.logical_and(p == 1, is_first))
    def _():
        mean = sum_ref[...] * inv_m
        var = ssq_ref[...] * inv_m - mean * mean      # biased variance
        s = g_ref[...] * lax.rsqrt(var + eps)         # fold affine once per channel
        scale_ref[...] = s
        shift_ref[...] = b_ref[...] - mean * s

    @pl.when(p == 1)
    def _():
        o_ref[0] = y * scale_ref[...] + shift_ref[...]


@functools.partial(jax.jit, static_argnames=("tile_hw",))
def factorized_reduce(x, w1, w2, gamma, beta, *, tile_hw=512):
    """FactorizedReduce forward. x: (N, C_in, H, W) f32 NCHW; returns NCHW."""
    x = x.astype(jnp.float32)
    n, c_in, h, w = x.shape
    c_half = w1.shape[0]
    c_out = 2 * c_half
    assert h % 2 == 0 and w % 2 == 0, "FactorizedReduce needs even H, W"
    ho, wo = h // 2, w // 2
    hw = ho * wo

    # Stride-2 subsampling for the two branches (no transposes needed: the
    # kernel grids over N and writes (N, C_out, Ho*Wo) blocks directly).
    xa = x[:, :, 0:2 * ho:2, 0:2 * wo:2].reshape(n, c_in, hw)       # even grid
    xb = x[:, :, 1:1 + 2 * ho:2, 1:1 + 2 * wo:2].reshape(n, c_in, hw)  # odd-odd
    xs = jnp.concatenate([xa, xb], axis=1)                          # (N, 2C_in, HW)

    # Block-diagonal combined weight -> single aligned (C_out, T) matmul per tile.
    z = jnp.zeros_like(w1, dtype=jnp.float32)
    w_bd = jnp.concatenate(
        [jnp.concatenate([w1.astype(jnp.float32), z], axis=1),
         jnp.concatenate([z, w2.astype(jnp.float32)], axis=1)], axis=0)  # (C_out, 2C_in)

    g2 = gamma.astype(jnp.float32).reshape(c_out, 1)
    b2 = beta.astype(jnp.float32).reshape(c_out, 1)

    # Tile the Ho*Wo lane axis: multiples of 128 (or the full extent). Zero
    # padding is stats-safe (padded lanes contribute 0 to sum / sum-of-squares).
    if hw <= tile_hw:
        t_hw = hw
        hw_pad = hw
    else:
        t_hw = tile_hw - (tile_hw % 128) if tile_hw % 128 else tile_hw
        hw_pad = ((hw + t_hw - 1) // t_hw) * t_hw
        if hw_pad != hw:
            xs = jnp.pad(xs, ((0, 0), (0, 0), (0, hw_pad - hw)))
    n_hw = hw_pad // t_hw
    inv_m = 1.0 / float(n * hw)        # global count, independent of tiling

    # VMEM budget: double-buffered in/out tiles + resident params + scratch.
    elt = 4
    buf_bytes = (2 * (2 * c_in) * t_hw + 2 * c_out * t_hw) * elt
    fixed_bytes = (c_out * 2 * c_in + 2 * c_out + 4 * c_out * 128) * elt
    vmem_limit = int(min(max(4 * (buf_bytes + fixed_bytes), 8 * 2**20), 48 * 2**20))

    out3 = pl.pallas_call(
        functools.partial(_fr_kernel, inv_m=inv_m, eps=_BN_EPS),
        out_shape=jax.ShapeDtypeStruct((n, c_out, hw_pad), jnp.float32),
        grid_spec=pltpu.PrefetchScalarGridSpec(
            num_scalar_prefetch=0,
            grid=(2, n, n_hw),                       # (pass, batch, hw-tile)
            in_specs=[
                pl.BlockSpec((1, 2 * c_in, t_hw), lambda p, b, m: (b, 0, m)),
                pl.BlockSpec((c_out, 2 * c_in), lambda p, b, m: (0, 0)),  # resident
                pl.BlockSpec((c_out, 1), lambda p, b, m: (0, 0)),          # resident
                pl.BlockSpec((c_out, 1), lambda p, b, m: (0, 0)),          # resident
            ],
            # During the stats pass (p=0) the output index is pinned to block 0,
            # so no garbage tiles are ever written back to HBM.
            out_specs=pl.BlockSpec((1, c_out, t_hw),
                                   lambda p, b, m: (b * p, 0, m * p)),
            scratch_shapes=[pltpu.VMEM((c_out, 1), jnp.float32)] * 4,
        ),
        compiler_params=pltpu.CompilerParams(
            dimension_semantics=("arbitrary", "arbitrary", "arbitrary"),
            vmem_limit_bytes=vmem_limit),
    )(xs, w_bd, g2, b2)

    # (N, C_out, Ho*Wo) -> (N, C_out, Ho, Wo): contiguous reshape, no transpose.
    return out3[:, :, :hw].reshape(n, c_out, ho, wo)


def _reference(x, w1, w2, gamma, beta):
    """Pure-JAX reference matching the PyTorch module (training-mode BN)."""
    x = x.astype(jnp.float32)
    c_half, c_in = w1.shape
    xr = jax.nn.relu(x)

    def conv(inp, wmat):
        return lax.conv_general_dilated(
            inp, wmat.reshape(c_half, c_in, 1, 1),
            window_strides=(2, 2), padding="VALID",
            dimension_numbers=("NCHW", "OIHW", "NCHW"))

    y1 = conv(xr, w1)
    y2 = conv(xr[:, :, 1:, 1:], w2)
    y = jnp.concatenate([y1, y2], axis=1)
    mean = jnp.mean(y, axis=(0, 2, 3), keepdims=True)
    var = jnp.mean(jnp.square(y - mean), axis=(0, 2, 3), keepdims=True)
    yhat = (y - mean) * lax.rsqrt(var + _BN_EPS)
    return yhat * gamma.reshape(1, -1, 1, 1) + beta.reshape(1, -1, 1, 1)


if __name__ == "__main__":
    key = jax.random.PRNGKey(0)
    k_x, k_w1, k_w2, k_g, k_b = jax.random.split(key, 5)

    # Small NCHW input: batch=2, C_in=4, spatial=16x16, C_out=8.
    n, c_in, h, w = 2, 4, 16, 16
    c_out = 8
    x = jax.random.normal(k_x, (n, c_in, h, w), dtype=jnp.float32)
    w1 = 0.5 * jax.random.normal(k_w1, (c_out // 2, c_in), dtype=jnp.float32)
    w2 = 0.5 * jax.random.normal(k_w2, (c_out // 2, c_in), dtype=jnp.float32)
    gamma = 1.0 + 0.1 * jax.random.normal(k_g, (c_out,), dtype=jnp.float32)
    beta = 0.1 * jax.random.normal(k_b, (c_out,), dtype=jnp.float32)

    out = jax.block_until_ready(factorized_reduce(x, w1, w2, gamma, beta))
    ref = jax.block_until_ready(_reference(x, w1, w2, gamma, beta))

    assert out.shape == (n, c_out, h // 2, w // 2), out.shape
    np.testing.assert_allclose(np.asarray(out), np.asarray(ref),
                               rtol=1e-3, atol=1e-3)
    print("KERNEL_OK")
</pallas_src>

<mosaic_0001>
module attributes {stable_mosaic.version = 11 : i64} {
  func.func @_fr_kernel(%arg0: i32, %arg1: i32, %arg2: i32, %arg3: memref<1x8x64xf32, #tpu.memory_space<vmem>>, %arg4: memref<8x8xf32, #tpu.memory_space<vmem>>, %arg5: memref<8x1xf32, #tpu.memory_space<vmem>>, %arg6: memref<8x1xf32, #tpu.memory_space<vmem>>, %arg7: memref<1x8x64xf32, #tpu.memory_space<vmem>>, %arg8: memref<8x1xf32, #tpu.memory_space<vmem>>, %arg9: memref<8x1xf32, #tpu.memory_space<vmem>>, %arg10: memref<8x1xf32, #tpu.memory_space<vmem>>, %arg11: memref<8x1xf32, #tpu.memory_space<vmem>>) attributes {dimension_semantics = [#tpu.dimension_semantics<arbitrary>, #tpu.dimension_semantics<arbitrary>, #tpu.dimension_semantics<arbitrary>], iteration_bounds = array<i64: 2, 2, 1>, scalar_prefetch = 0 : i64, scratch_operands = 4 : i64, tpu.core_type = #tpu.core_type<tc>, window_params = [{transform_indices = @transform_0, window_bounds = array<i64: 1, 8, 64>}, {pipeline_mode = #tpu.pipeline_mode<synchronous>, transform_indices = @transform_1, window_bounds = array<i64: 8, 8>}, {pipeline_mode = #tpu.pipeline_mode<synchronous>, transform_indices = @transform_2, window_bounds = array<i64: 8, 1>}, {pipeline_mode = #tpu.pipeline_mode<synchronous>, transform_indices = @transform_3, window_bounds = array<i64: 8, 1>}, {transform_indices = @transform_4, window_bounds = array<i64: 1, 8, 64>}]} {
    %c0_i32 = arith.constant 0 : i32
    %0 = arith.cmpi eq, %arg1, %c0_i32 : i32
    %c0_i32_0 = arith.constant 0 : i32
    %1 = arith.cmpi eq, %arg2, %c0_i32_0 : i32
    %2 = arith.andi %0, %1 : i1
    %c0 = arith.constant 0 : index
    %c0_1 = arith.constant 0 : index
    %c0_2 = arith.constant 0 : index
    %3 = vector.load %arg3[%c0, %c0_1, %c0_2] : memref<1x8x64xf32, #tpu.memory_space<vmem>>, vector<1x8x64xf32>
    %4 = vector.shape_cast %3 : vector<1x8x64xf32> to vector<8x64xf32>
    %cst = arith.constant 0.000000e+00 : f32
    %5 = vector.broadcast %cst : f32 to vector<8x64xf32>
    %6 = arith.maximumf %4, %5 : vector<8x64xf32>
    %c0_3 = arith.constant 0 : index
    %c0_4 = arith.constant 0 : index
    %7 = vector.load %arg4[%c0_3, %c0_4] : memref<8x8xf32, #tpu.memory_space<vmem>>, vector<8x8xf32>
    %cst_5 = arith.constant dense<0.000000e+00> : vector<8x64xf32>
    %8 = tpu.matmul %7, %6, %cst_5 {dimension_numbers = #tpu.dot_dimension_numbers<[1], [0], [0], [1], [0, 0, 1, 1], [], []>} : vector<8x8xf32>, vector<8x64xf32>, vector<8x64xf32> -> vector<8x64xf32>
    %c0_i32_6 = arith.constant 0 : i32
    %9 = arith.cmpi eq, %arg0, %c0_i32_6 : i32
    %10 = arith.andi %9, %2 : i1
    %11 = arith.extui %10 : i1 to i32
    %c0_i32_7 = arith.constant 0 : i32
    %12 = arith.cmpi ne, %11, %c0_i32_7 : i32
    scf.if %12 {
      %cst_13 = arith.constant 0.000000e+00 : f32
      %23 = vector.broadcast %cst_13 : f32 to vector<8x1xf32>
      %c0_14 = arith.constant 0 : index
      %c0_15 = arith.constant 0 : index
      %24 = vector.load %arg8[%c0_14, %c0_15] : memref<8x1xf32, #tpu.memory_space<vmem>>, vector<8x1xf32>
      tpu.vector_store %arg8[%c0_14, %c0_15], %23 {strides = array<i32>} : memref<8x1xf32, #tpu.memory_space<vmem>>, vector<8x1xf32>,
      %cst_16 = arith.constant 0.000000e+00 : f32
      %25 = vector.broadcast %cst_16 : f32 to vector<8x1xf32>
      %c0_17 = arith.constant 0 : index
      %c0_18 = arith.constant 0 : index
      %26 = vector.load %arg9[%c0_17, %c0_18] : memref<8x1xf32, #tpu.memory_space<vmem>>, vector<8x1xf32>
      tpu.vector_store %arg9[%c0_17, %c0_18], %25 {strides = array<i32>} : memref<8x1xf32, #tpu.memory_space<vmem>>, vector<8x1xf32>,
    } else {
    }
    %c0_i32_8 = arith.constant 0 : i32
    %13 = arith.cmpi eq, %arg0, %c0_i32_8 : i32
    %14 = arith.extui %13 : i1 to i32
    %c0_i32_9 = arith.constant 0 : i32
    %15 = arith.cmpi ne, %14, %c0_i32_9 : i32
    scf.if %15 {
      %c0_13 = arith.constant 0 : index
      %c0_14 = arith.constant 0 : index
      %23 = vector.load %arg8[%c0_13, %c0_14] : memref<8x1xf32, #tpu.memory_space<vmem>>, vector<8x1xf32>
      %cst_15 = arith.constant dense<0.000000e+00> : vector<8xf32>
      %24 = vector.multi_reduction <add>, %8, %cst_15 [1] : vector<8x64xf32> to vector<8xf32>
      %25 = vector.shape_cast %24 : vector<8xf32> to vector<8x1xf32>
      %26 = arith.addf %23, %25 : vector<8x1xf32>
      %c0_16 = arith.constant 0 : index
      %c0_17 = arith.constant 0 : index
      %27 = vector.load %arg8[%c0_16, %c0_17] : memref<8x1xf32, #tpu.memory_space<vmem>>, vector<8x1xf32>
      tpu.vector_store %arg8[%c0_16, %c0_17], %26 {strides = array<i32>} : memref<8x1xf32, #tpu.memory_space<vmem>>, vector<8x1xf32>,
      %c0_18 = arith.constant 0 : index
      %c0_19 = arith.constant 0 : index
      %28 = vector.load %arg9[%c0_18, %c0_19] : memref<8x1xf32, #tpu.memory_space<vmem>>, vector<8x1xf32>
      %29 = arith.mulf %8, %8 : vector<8x64xf32>
      %cst_20 = arith.constant dense<0.000000e+00> : vector<8xf32>
      %30 = vector.multi_reduction <add>, %29, %cst_20 [1] : vector<8x64xf32> to vector<8xf32>
      %31 = vector.shape_cast %30 : vector<8xf32> to vector<8x1xf32>
      %32 = arith.addf %28, %31 : vector<8x1xf32>
      %c0_21 = arith.constant 0 : index
      %c0_22 = arith.constant 0 : index
      %33 = vector.load %arg9[%c0_21, %c0_22] : memref<8x1xf32, #tpu.memory_space<vmem>>, vector<8x1xf32>
      tpu.vector_store %arg9[%c0_21, %c0_22], %32 {strides = array<i32>} : memref<8x1xf32, #tpu.memory_space<vmem>>, vector<8x1xf32>,
    } else {
    }
    %c1_i32 = arith.constant 1 : i32
    %16 = arith.cmpi eq, %arg0, %c1_i32 : i32
    %17 = arith.andi %16, %2 : i1
    %18 = arith.extui %17 : i1 to i32
    %c0_i32_10 = arith.constant 0 : i32
    %19 = arith.cmpi ne, %18, %c0_i32_10 : i32
    scf.if %19 {
      %c0_13 = arith.constant 0 : index
      %c0_14 = arith.constant 0 : index
      %23 = vector.load %arg8[%c0_13, %c0_14] : memref<8x1xf32, #tpu.memory_space<vmem>>, vector<8x1xf32>
      %cst_15 = arith.constant 7.812500e-03 : f32
      %24 = vector.broadcast %cst_15 : f32 to vector<8x1xf32>
      %25 = arith.mulf %23, %24 : vector<8x1xf32>
      %c0_16 = arith.constant 0 : index
      %c0_17 = arith.constant 0 : index
      %26 = vector.load %arg9[%c0_16, %c0_17] : memref<8x1xf32, #tpu.memory_space<vmem>>, vector<8x1xf32>
      %cst_18 = arith.constant 7.812500e-03 : f32
      %27 = vector.broadcast %cst_18 : f32 to vector<8x1xf32>
      %28 = arith.mulf %26, %27 : vector<8x1xf32>
      %29 = arith.mulf %25, %25 : vector<8x1xf32>
      %30 = arith.subf %28, %29 : vector<8x1xf32>
      %c0_19 = arith.constant 0 : index
      %c0_20 = arith.constant 0 : index
      %31 = vector.load %arg5[%c0_19, %c0_20] : memref<8x1xf32, #tpu.memory_space<vmem>>, vector<8x1xf32>
      %cst_21 = arith.constant 9.99999974E-6 : f32
      %32 = vector.broadcast %cst_21 : f32 to vector<8x1xf32>
      %33 = arith.addf %30, %32 : vector<8x1xf32>
      %34 = math.rsqrt %33 : vector<8x1xf32>
      %35 = arith.mulf %31, %34 : vector<8x1xf32>
      %c0_22 = arith.constant 0 : index
      %c0_23 = arith.constant 0 : index
      %36 = vector.load %arg10[%c0_22, %c0_23] : memref<8x1xf32, #tpu.memory_space<vmem>>, vector<8x1xf32>
      tpu.vector_store %arg10[%c0_22, %c0_23], %35 {strides = array<i32>} : memref<8x1xf32, #tpu.memory_space<vmem>>, vector<8x1xf32>,
      %c0_24 = arith.constant 0 : index
      %c0_25 = arith.constant 0 : index
      %37 = vector.load %arg6[%c0_24, %c0_25] : memref<8x1xf32, #tpu.memory_space<vmem>>, vector<8x1xf32>
      %38 = arith.mulf %25, %35 : vector<8x1xf32>
      %39 = arith.subf %37, %38 : vector<8x1xf32>
      %c0_26 = arith.constant 0 : index
      %c0_27 = arith.constant 0 : index
      %40 = vector.load %arg11[%c0_26, %c0_27] : memref<8x1xf32, #tpu.memory_space<vmem>>, vector<8x1xf32>
      tpu.vector_store %arg11[%c0_26, %c0_27], %39 {strides = array<i32>} : memref<8x1xf32, #tpu.memory_space<vmem>>, vector<8x1xf32>,
    } else {
    }
    %c1_i32_11 = arith.constant 1 : i32
    %20 = arith.cmpi eq, %arg0, %c1_i32_11 : i32
    %21 = arith.extui %20 : i1 to i32
    %c0_i32_12 = arith.constant 0 : i32
    %22 = arith.cmpi ne, %21, %c0_i32_12 : i32
    scf.if %22 {
      %c0_13 = arith.constant 0 : index
      %c0_14 = arith.constant 0 : index
      %23 = vector.load %arg10[%c0_13, %c0_14] : memref<8x1xf32, #tpu.memory_space<vmem>>, vector<8x1xf32>
      %24 = vector.broadcast %23 : vector<8x1xf32> to vector<8x64xf32>
      %25 = arith.mulf %8, %24 : vector<8x64xf32>
      %c0_15 = arith.constant 0 : index
      %c0_16 = arith.constant 0 : index
      %26 = vector.load %arg11[%c0_15, %c0_16] : memref<8x1xf32, #tpu.memory_space<vmem>>, vector<8x1xf32>
      %27 = vector.broadcast %26 : vector<8x1xf32> to vector<8x64xf32>
      %28 = arith.addf %25, %27 : vector<8x64xf32>
      %c0_17 = arith.constant 0 : index
      %c0_18 = arith.constant 0 : index
      %c0_19 = arith.constant 0 : index
      %29 = vector.load %arg7[%c0_17, %c0_18, %c0_19] : memref<1x8x64xf32, #tpu.memory_space<vmem>>, vector<1x8x64xf32>
      %30 = vector.shape_cast %29 : vector<1x8x64xf32> to vector<8x64xf32>
      %31 = vector.shape_cast %28 : vector<8x64xf32> to vector<1x8x64xf32>
      tpu.vector_store %arg7[%c0_17, %c0_18, %c0_19], %31 {strides = array<i32>} : memref<1x8x64xf32, #tpu.memory_space<vmem>>, vector<1x8x64xf32>,
    } else {
    }
    return
  }
  func.func @transform_0(%arg0: i32, %arg1: i32, %arg2: i32) -> (i32, i32, i32) {
    %c0_i32 = arith.constant 0 : i32
    %c0_i32_0 = arith.constant 0 : i32
    return %arg1, %c0_i32, %arg2 : i32, i32, i32
  }
  func.func @transform_1(%arg0: i32, %arg1: i32, %arg2: i32) -> (i32, i32) {
    %c0_i32 = arith.constant 0 : i32
    %c0_i32_0 = arith.constant 0 : i32
    %c0_i32_1 = arith.constant 0 : i32
    return %c0_i32, %c0_i32_0 : i32, i32
  }
  func.func @transform_2(%arg0: i32, %arg1: i32, %arg2: i32) -> (i32, i32) {
    %c0_i32 = arith.constant 0 : i32
    %c0_i32_0 = arith.constant 0 : i32
    %c0_i32_1 = arith.constant 0 : i32
    return %c0_i32, %c0_i32_0 : i32, i32
  }
  func.func @transform_3(%arg0: i32, %arg1: i32, %arg2: i32) -> (i32, i32) {
    %c0_i32 = arith.constant 0 : i32
    %c0_i32_0 = arith.constant 0 : i32
    %c0_i32_1 = arith.constant 0 : i32
    return %c0_i32, %c0_i32_0 : i32, i32
  }
  func.func @transform_4(%arg0: i32, %arg1: i32, %arg2: i32) -> (i32, i32, i32) {
    %0 = arith.muli %arg1, %arg0 : i32
    %1 = arith.muli %arg2, %arg0 : i32
    %c0_i32 = arith.constant 0 : i32
    %c0_i32_0 = arith.constant 0 : i32
    return %0, %c0_i32, %1 : i32, i32, i32
  }
}

</mosaic_0001>

<bundles_post_ra>
// kernel: factorized_reduce.1
= control target key start
LH: loop header
LB: loop body
LE: loop exit
PB: predicated region body
PF: predicated region fallthrough
CT: control target
= control target key end

     0   :  { %s560_s15 = smov 0   ;;  %s562_s16 = smov 0   ;;  %s646_s0 = inlined_call_operand.vmem [shape: f32[2,8,64], index: 0, kind: input, shape index: {}]   ;;  %s647_s1 = inlined_call_operand.vmem [shape: f32[8,8], index: 1, kind: input, shape index: {}]   ;;  %s648_s2 = inlined_call_operand.vmem [shape: f32[8,1], index: 2, kind: input, shape index: {}]   ;;  %s649_s3 = inlined_call_operand.vmem [shape: f32[8,1], index: 3, kind: input, shape index: {}]   ;;  %s650_s4 = inlined_call_operand.vmem [shape: f32[2,8,64], index: 4, kind: output, shape index: {}]  }
   0x1   :  { %s564_s17 = smov 0   ;;  %s566_s18 = smov 0  }
   0x2   :  { %s568_s19 = smov 0  }
   0x3 LB: > { %s29_s20 = sadd.s32 1, %s523_s17  ;;  %s33_s21 = sadd.s32 1, %s527_s18  ;;  %s531_s19 = sphi %s568_s19, %s14_s19   ;;  %s527_s18 = sphi %s566_s18, %s654_s18   ;;  %s523_s17 = sphi %s564_s17, %s653_s17   ;;  %s519_s16 = sphi %s562_s16, %s652_s16   ;;  %s515_s15 = sphi %s560_s15, %s651_s15  }
   0x4   : > { %p31_p0 = scmp.ge.s32.totalorder %s29_s20, 2  ;;  %p438_p1 = scmp.ge.s32.totalorder %s531_s19, 1 }
   0x5   : > { %p191_p2 = scmp.lt.s32.totalorder %s531_s19, 5 }
   0x6   : > { %s656_s20 = smov (%p31_p0, %s29_s20), 0  ;;  %s658_s21 = smov (!%p31_p0, %s33_s21), %s527_s18 }
   0x7   : > { %p192_p3 = pnand %p438_p1, %p191_p2  ;;  %p35_p4 = scmp.ge.s32.totalorder %s658_s21, 2 }
   0x8   : > { %p223_p5 = scmp.lt.s32.totalorder (!%p192_p3), %s515_s15, 1  ;;  %s230_s22 = smul.u32 (!%p192_p3), %s515_s15, %s519_s16 }
   0x9   : > { %s660_s21 = smov (%p35_p4, %s658_s21), 0  ;;  %195 = sbr.rel (%p192_p3) target bundleno = 465 (0x1d1), region = 36 }
   0xa   : > { %p232_p6 = scmp.lt.s32.totalorder (!%p192_p3), %s230_s22, 1  ;;  %p241_p7 = scmp.eq.s32.totalorder (!%p192_p3), %s515_s15, 0 }
   0xb   : > { %p272_p8 = scmp.eq.s32.totalorder (!%p192_p3), %s519_s16, 0 }
   0xd   : > { %p273_p9 = pnand (!%p192_p3), %p272_p8, %p241_p7 }
   0xe   : > { %s224_s23 = scalar_select %p223_p5, %s515_s15, 1  ;;  %v247_v2 = vld [vmem:[%s647_s1] sm:$0xff]  ;;  %vm248_vm0 = vcmask 64512  }
   0xf   : > { %s662_s22 = smov (!%p232_p6, %s230_s22), 1 }
  0x10   : > { %s439_s24 = sshll.u32 %s224_s23, 3  ;;  %s440_s30 = sshll.u32 %s662_s22, 3 }
  0x11   : > { %s229_s27 = scalar_lea.vmem %s646_s0, %s439_s24  ;;  %s611_s7 = scalar_lea.vmem %s650_s4, %s440_s30 }
  0x12   : > { %v245_v0 = vld [vmem:[%s229_s27] sm:$0xff] }
  0x13   : > { %v246_v1 = vmax.f32 %v245_v0, 0.0 }
  0x15   : > { %267 = vmatpush.msra.mxu0 %v246_v1 }
  0x16   : > { %442 = vmatmul.msk.f32.vlgmr.msra.gmra.mxu0 %vm248_vm0, %v247_v2 }
  0x8f   : > { %276 = sbr.rel (%p273_p9) target bundleno = 151 (0x97), region = 40 }
  0x93   : > { %v613_v3 = vpop.f32.mrf.mxu0 }
  0x94   : > { %vm277_vm1 = vcmask 7168   ;;  %v533_v4 = vmov 0.0  }
  0x95   : > { %278 = vst.msk [vmem:[#allocation2] sm:$0xff] %vm277_vm1, %v533_v4 }
  0x96   : > { %279 = vst.msk [vmem:[#allocation3] sm:$0xff] %vm277_vm1, %v533_v4 }
  0x97 PF: > { %p443_p10 = scmp.ne.s32.totalorder %s519_s16, 0 }
  0x99   : > { %282 = sbr.rel (%p443_p10) target bundleno = 287 (0x11f), region = 44 }
  0x9e   : > { %vm284_vm2 = vcmask 523264   ;;  %v292_v6 = vmul.f32 %v613_v3, %v613_v3  ;;  %v283_v8 = vld [vmem:[#allocation2] sm:$0xff]  ;;  %vm289_vm3 = vcmask 7168   ;;  %v291_v11 = vld [vmem:[#allocation3] sm:$0xff] }
  0x9f   : > { %v285_v5 = vsel %vm284_vm2, %v613_v3, 0.0 }
  0xa0   : > { %286 = vadd.xlane.f32.xlu0 %v285_v5  ;;  %v293_v7 = vsel %vm284_vm2, %v292_v6, 0.0 }
  0xa8   : > { %294 = vadd.xlane.f32.xlu0 %v293_v7 }
 0x113   : > { %v287_v9 = vpop.xlane.xlu0 %286 }
 0x114   : > { %v288_v10 = vadd.f32 %v287_v9, %v283_v8 }
 0x116   : > { %290 = vst.msk [vmem:[#allocation2] sm:$0xff] %vm289_vm3, %v288_v10 }
 0x11b   : > { %v295_v12 = vpop.xlane.xlu0 %294 }
 0x11c   : > { %v296_v13 = vadd.f32 %v295_v12, %v291_v11 }
 0x11e   : > { %297 = vst.msk [vmem:[#allocation3] sm:$0xff] %vm289_vm3, %v296_v13 }
 0x11f PF: > { %p298_p11 = scmp.eq.s32.totalorder %s519_s16, 1 }
 0x121   : > { %p299_p12 = pnand %p298_p11, %p241_p7 }
 0x123   : > { %302 = sbr.rel (%p299_p12) target bundleno = 330 (0x14a), region = 48 }
 0x128   : > { %v303_v14 = vld [vmem:[#allocation2] sm:$0xff]  ;;  %v305_v15 = vld [vmem:[#allocation3] sm:$0xff]  ;;  %vm322_vm7 = vcmask 7168  }
 0x129   : > { %v304_v16 = vmul.f32 0.0078125, %v303_v14  ;;  %v306_v17 = vmul.f32 0.0078125, %v305_v15  ;;  %v309_v26 = vld [vmem:[%s648_s2] sm:$0xff] }
 0x12a   : > { %v324_v30 = vld [vmem:[%s649_s3] sm:$0xff] }
 0x12b   : > { %v307_v18 = vmul.f32 %v304_v16, %v304_v16 }
 0x12d   : > { %v308_v19 = vsub.f32 %v306_v17, %v307_v18 }
 0x12f   : > { %v310_v20 = vadd.f32 1e-05, %v308_v19 }
 0x131   : > { %490 = vrsqrt.f32 %v310_v20  ;;  %vm317_vm4 = vweird.f32 %v310_v20 }
 0x137   : > { %v491_v21 = vpop.eup %490 }
 0x138   : > { %v312_v22 = vmul.f32 %v491_v21, %v310_v20  ;;  %vm318_vm5 = vweird.f32 %v491_v21 }
 0x139   : > { %vm319_vm6 = vmor %vm317_vm4, %vm318_vm5 }
 0x13a   : > { %v313_v23 = vmul.f32 %v491_v21, %v312_v22 }
 0x13c   : > { %v314_v24 = vmul.f32 0.5, %v313_v23 }
 0x13e   : > { %v315_v25 = vsub.f32 1.5, %v314_v24 }
 0x140   : > { %v316_v27 = vmul.f32 %v491_v21, %v315_v25 }
 0x142   : > { %v320_v28 = vsel %vm319_vm6, %v491_v21, %v316_v27 }
 0x143   : > { %v321_v29 = vmul.f32 %v320_v28, %v309_v26 }
 0x145   : > { %323 = vst.msk [vmem:[#allocation4] sm:$0xff] %vm322_vm7, %v321_v29  ;;  %v325_v31 = vmul.f32 %v321_v29, %v304_v16 }
 0x147   : > { %v326_v32 = vsub.f32 %v324_v30, %v325_v31 }
 0x149   : > { %327 = vst.msk [vmem:[#allocation5] sm:$0xff] %vm322_vm7, %v326_v32 }
 0x14a PF: > { %p444_p13 = scmp.ne.s32.totalorder %s519_s16, 1 }
 0x14c   : > { %330 = sbr.rel (%p444_p13) target bundleno = 465 (0x1d1), region = 52 }
 0x151   : > { %v331_v33 = vld [vmem:[#allocation4] sm:$0xff]  ;;  %v534_v34 = vmov 0   ;;  %v338_v35 = vld [vmem:[#allocation5] sm:$0xff]  ;;  %vm345_vm8 = vcmask 523264  }
 0x152   : > { %492 = vset.pattern.permute.xlu0 %v534_v34 }
 0x153   : > { %334 = vperm.xlu0 %492, %v331_v33  }
 0x15b   : > { %341 = vperm.xlu0 %492, %v338_v35  }
 0x1c5   : > { %v335_v36 = vpop.permute.xlu0 %334 }
 0x1c6   : > { %v337_v37 = vmul.f32 %v335_v36, %v613_v3 }
 0x1cd   : > { %v342_v38 = vpop.permute.xlu0 %341 }
 0x1ce   : > { %v344_v39 = vadd.f32 %v342_v38, %v337_v37 }
 0x1d0   : > { %346 = vst.msk [vmem:[%s611_s7] sm:$0xff] %vm345_vm8, %v344_v39 }
 0x1d1 PF: > { %s14_s19 = sadd.s32 1, %s531_s19   ;;  %s651_s15 = smov %s523_s17 }
 0x1d2   : > { %p11_p0 = scmp.ge.s32.totalorder %s14_s19, 6   ;;  %s652_s16 = smov %s527_s18 }
 0x1d3   : > { %s653_s17 = smov %s656_s20  ;;  %s654_s18 = smov %s660_s21 }
 0x1d4   :  { %13 = sbr.rel (!%p11_p0) target bundleno = 3 (0x3), region = 82 }

</bundles_post_ra>
